<compile_context>
chip_gen: v5e
topology: v5e:2x2
jax: 0.10.0
libtpu: 0.0.40
codegen_flags: <defaults>
</compile_context>

<pallas_src>
import math

import jax
import jax.numpy as jnp
from jax.experimental import pallas as pl
from jax.experimental.pallas import tpu as pltpu


def _exp_kernel(x_ref, o_ref):
    # Elementwise exp on the current VMEM tile (EUP transcendental slot).
    o_ref[...] = jnp.exp(x_ref[...])


# Below this, kernel-launch + reshape overhead dominates -> plain jnp.exp.
_SMALL_FALLBACK_ELEMS = 512
# Lane-dense last dims to try (all multiples of 128), widest first.
_LANE_CHOICES = (2048, 1024, 512, 256, 128)
# Row-tile granularity: multiple of 32 is legal sublane packing for f32/bf16/i8.
_ROW_ALIGN = 32
# Keep at least this many grid steps when the tensor allows it: pipelining
# overlap on all parts, and both TensorCores busy on v7x.
_MIN_GRID_STEPS = 8
# Per-block byte budgets (dtype independent).
_DEFAULT_BLOCK_BYTES = 4 << 20   # v7x-safe (64 MiB physical VMEM / TC)
_BIG_VMEM_BLOCK_BYTES = 8 << 20  # v5e/v6e (128 MiB physical VMEM)


def _block_bytes_target() -> int:
    try:
        info = pltpu.get_tpu_info()
        vmem_cap = int(getattr(info, "vmem_capacity_bytes", 0))
        if vmem_cap >= (100 << 20):          # 128 MiB-VMEM parts (v5e / v6e)
            return _BIG_VMEM_BLOCK_BYTES
    except Exception:
        pass
    return _DEFAULT_BLOCK_BYTES


def _pick_lanes(total: int):
    """Widest lane-dense last dim that divides `total` exactly, preferring one
    that leaves enough rows for a multi-step grid."""
    divisors = [c for c in _LANE_CHOICES if total % c == 0]
    if not divisors:
        return None
    min_rows = _ROW_ALIGN * _MIN_GRID_STEPS
    for c in divisors:                        # widest first
        if total // c >= min_rows:
            return c
    return divisors[0]                        # tiny tensor: just go widest


def _pick_tile_rows(rows: int, row_bytes: int, block_bytes: int) -> int:
    # Rows per block from the byte budget, multiple of _ROW_ALIGN.
    tile = max(_ROW_ALIGN, (block_bytes // row_bytes) // _ROW_ALIGN * _ROW_ALIGN)
    # Cap so the grid has >= _MIN_GRID_STEPS steps whenever possible.
    cap = (rows // _MIN_GRID_STEPS) // _ROW_ALIGN * _ROW_ALIGN
    if cap >= _ROW_ALIGN:
        tile = min(tile, cap)
    if tile >= rows:
        tile = rows                           # tiny tensor: single full-extent block
    return tile


def logit_scale_exp(x: jax.Array) -> jax.Array:
    """Elementwise exp (LogitScaleExp.forward). Preserves shape and float dtype."""
    # torch's .exp() promotes integer inputs to float; jnp.exp matches that.
    if not jnp.issubdtype(x.dtype, jnp.floating):
        return jnp.exp(x)

    total = x.size
    # Scalar / tiny inputs (e.g. CLIP's logit_scale scalar): no kernel.
    if total == 0 or total < _SMALL_FALLBACK_ELEMS:
        return jnp.exp(x)

    lanes = _pick_lanes(total)
    if lanes is None:
        # Size not a multiple of 128: exp is memory-bound either way; padding
        # would double bytes accessed, so let XLA handle it.
        return jnp.exp(x)

    orig_shape = x.shape
    dtype = x.dtype
    itemsize = jnp.dtype(dtype).itemsize
    rows = total // lanes
    row_bytes = lanes * itemsize

    tile_rows = _pick_tile_rows(rows, row_bytes, _block_bytes_target())
    grid = (pl.cdiv(rows, tile_rows),)        # ragged tail -> masked partial block

    block_bytes = tile_rows * row_bytes
    # 2 arrays (in + out) x 2 pipeline buffers each, plus headroom for Mosaic
    # internal scratch; clamp to stay comfortably under v7x's 64 MiB VMEM.
    vmem_limit = min(max(4 * block_bytes + (4 << 20), 16 << 20), 56 << 20)

    x2d = x.reshape(rows, lanes)
    out2d = pl.pallas_call(
        _exp_kernel,
        out_shape=jax.ShapeDtypeStruct((rows, lanes), dtype),
        grid=grid,
        in_specs=[pl.BlockSpec((tile_rows, lanes), lambda i: (i, 0))],
        out_specs=pl.BlockSpec((tile_rows, lanes), lambda i: (i, 0)),
        input_output_aliases={0: 0},          # exp is shape/dtype preserving
        compiler_params=pltpu.CompilerParams(
            dimension_semantics=("parallel",),
            vmem_limit_bytes=vmem_limit,
        ),
    )(x2d)

    return out2d.reshape(orig_shape)


def logit_scale_exp_inverse(x: float) -> float:
    # Mirrors LogitScaleExp.inverse (host-side scalar log); no kernel needed.
    return math.log(x)


def get_logit_scale(raw_logit_scale: jax.Array) -> jax.Array:
    """CLIP.get_logit_scale(): apply the exp activation to the scalar parameter."""
    return logit_scale_exp(raw_logit_scale)


if __name__ == "__main__":
    key = jax.random.PRNGKey(0)
    k1, k2, k3 = jax.random.split(key, 3)

    # 1) The real CLIP case: logit_scale is a scalar parameter (kernel bypass).
    raw_logit_scale = jnp.asarray(math.log(1.0 / 0.07), dtype=jnp.float32)
    scale = jax.block_until_ready(get_logit_scale(raw_logit_scale))
    assert jnp.allclose(scale, jnp.exp(raw_logit_scale), rtol=1e-6, atol=1e-6)

    # 2) Small NCHW tensor through the kernel (single full-extent block).
    x_small = jax.random.normal(k1, (2, 4, 16, 16), dtype=jnp.float32)
    out_small = jax.block_until_ready(logit_scale_exp(x_small))
    assert out_small.shape == x_small.shape and out_small.dtype == x_small.dtype
    assert jnp.allclose(out_small, jnp.exp(x_small), rtol=1e-6, atol=1e-6)

    # 3) Larger f32 tensor: multi-step grid (>= 8 steps) + masked partial block.
    x_large = jax.random.normal(k2, (8, 3, 224, 224), dtype=jnp.float32)
    out_large = jax.block_until_ready(logit_scale_exp(x_large))
    assert out_large.shape == x_large.shape and out_large.dtype == x_large.dtype
    assert jnp.allclose(out_large, jnp.exp(x_large), rtol=1e-6, atol=1e-6)

    # 4) Medium bf16 tensor: byte-sized blocks keep DMA granularity constant.
    x_bf16 = jax.random.normal(k3, (4, 64, 2048), dtype=jnp.bfloat16)
    out_bf16 = jax.block_until_ready(logit_scale_exp(x_bf16))
    assert out_bf16.shape == x_bf16.shape and out_bf16.dtype == x_bf16.dtype
    assert jnp.allclose(out_bf16.astype(jnp.float32),
                        jnp.exp(x_bf16).astype(jnp.float32),
                        rtol=2e-2, atol=2e-2)

    print("KERNEL_OK")
</pallas_src>

<mosaic_0001>
module attributes {stable_mosaic.version = 11 : i64} {
  func.func @_exp_kernel(%arg0: i32, %arg1: memref<1x2048xf32, #tpu.memory_space<vmem>>, %arg2: memref<1x2048xf32, #tpu.memory_space<vmem>>) attributes {dimension_semantics = [#tpu.dimension_semantics<parallel>], iteration_bounds = array<i64: 1>, scalar_prefetch = 0 : i64, scratch_operands = 0 : i64, tpu.core_type = #tpu.core_type<tc>, window_params = [{transform_indices = @transform_0, window_bounds = array<i64: 1, 2048>}, {transform_indices = @transform_1, window_bounds = array<i64: 1, 2048>}]} {
    %c0 = arith.constant 0 : index
    %c0_0 = arith.constant 0 : index
    %0 = vector.load %arg1[%c0, %c0_0] : memref<1x2048xf32, #tpu.memory_space<vmem>>, vector<1x2048xf32>
    %1 = math.exp %0 : vector<1x2048xf32>
    %c0_1 = arith.constant 0 : index
    %c0_2 = arith.constant 0 : index
    %2 = vector.load %arg2[%c0_1, %c0_2] : memref<1x2048xf32, #tpu.memory_space<vmem>>, vector<1x2048xf32>
    tpu.vector_store %arg2[%c0_1, %c0_2], %1 {strides = array<i32>} : memref<1x2048xf32, #tpu.memory_space<vmem>>, vector<1x2048xf32>,
    return
  }
  func.func @transform_0(%arg0: i32) -> (i32, i32) {
    %c0_i32 = arith.constant 0 : i32
    %c0_i32_0 = arith.constant 0 : i32
    return %arg0, %c0_i32 : i32, i32
  }
  func.func @transform_1(%arg0: i32) -> (i32, i32) {
    %c0_i32 = arith.constant 0 : i32
    %c0_i32_0 = arith.constant 0 : i32
    return %arg0, %c0_i32 : i32, i32
  }
}

</mosaic_0001>

<bundles_post_ra>
// kernel: tpu_custom_call.1
= control target key start
LH: loop header
LB: loop body
LE: loop exit
PB: predicated region body
PF: predicated region fallthrough
CT: control target
= control target key end

     0   :  { %6 = vsyncpa [#allocation3], 0  ;;  %s124_s0 = inlined_call_operand.hbm [shape: f32[1,2048], index: 0, kind: input, shape index: {}, may-alias: {0,1}]   ;;  %s125_s1 = inlined_call_operand.hbm [shape: f32[1,2048], index: 1, kind: output, shape index: {}, may-alias: {0,1}]  }
   0x1   :  { %7 = vsyncpa [#allocation4], 0  ;;  %s13_s8 = sshll.u32 %s124_s0, 4  ;;  %s106_s9 = smov [#allocation2]   ;;  %s14_s8 = int_to_ptr.hbm [resolvable:$true] %s13_s8 }
   0x2   :  { %s15_s10 = sshll.u32 %s106_s9, 4  ;;  %s16_s10 = int_to_ptr.vmem [resolvable:$true] %s15_s10 }
   0x3   :  { %18 = dma.hbm_to_vmem [thread:$0]  %s14_s8, 256, %s16_s10, [#allocation3]  }
   0x4   :  { %102 = dma.done.wait [#allocation3], 256  }
   0x5   :  { %103 = vsyncadd [#allocation3], 4294967040  ;;  %v23_v0 = vld [vmem:[#allocation2] sm:$0xff]  ;;  %v24_v1 = vld [vmem:[#allocation2 + $0x8] sm:$0xff]  ;;  %s107_s11 = smov [#allocation5]   ;;  %s38_s15 = sshll.u32 %s125_s1, 4  ;;  %s39_s15 = int_to_ptr.hbm [resolvable:$true] %s38_s15 }
   0x6   :  { %v25_v2 = vmul.f32 1.442695, %v23_v0  ;;  %v27_v3 = vmul.f32 1.442695, %v24_v1  ;;  %s36_s12 = sshll.u32 %s107_s11, 4  ;;  %s37_s12 = int_to_ptr.vmem [resolvable:$true] %s36_s12 }
   0x8   :  { %50 = vpow2.f32 %v25_v2 }
   0x9   :  { %52 = vpow2.f32 %v27_v3 }
   0xe   :  { %v51_v4 = vpop.eup %50 }
   0xf   :  { %v53_v5 = vpop.eup %52  ;;  %29 = vst [vmem:[#allocation5] sm:$0xff] %v51_v4 }
  0x10   :  { %30 = vst [vmem:[#allocation5 + $0x8] sm:$0xff] %v53_v5 }
  0x11   :  { %41 = dma.vmem_to_hbm [thread:$0]  %s37_s12, 256, %s39_s15, [#allocation4]  }
  0x12   :  { %104 = dma.done.wait [#allocation4], 256  }
  0x13   :  { %105 = vsyncadd [#allocation4], 4294967040 }
  0x14   :  { %46 = vsyncpa [#allocation3], 1 }
  0x15   :  { %47 = vsyncpa [#allocation4], 1 }

</bundles_post_ra>
